<compile_context>
chip_gen: v5e
topology: v5e:2x2
jax: 0.10.0
libtpu: 0.0.40
codegen_flags: <defaults>
</compile_context>

<pallas_src>
import jax
import jax.numpy as jnp
from jax.experimental import pallas as pl
from jax.experimental.pallas import tpu as pltpu


def linear_kernel(wb_ref, x_ref, o_ref):
    # wb_ref: SMEM (1, 4) f32  -> [w0, w1, w2, bias]
    # x_ref : VMEM (3, tile_r, 128), batch dense on (sublane, lane)
    # o_ref : VMEM (tile_r, 128) f32, full-width unmasked stores
    w0 = wb_ref[0, 0]
    w1 = wb_ref[0, 1]
    w2 = wb_ref[0, 2]
    b = wb_ref[0, 3]
    # Three dense feature planes (tile_r, 128); upcast is a no-op for f32 input.
    x0 = x_ref[0].astype(jnp.float32)
    x1 = x_ref[1].astype(jnp.float32)
    x2 = x_ref[2].astype(jnp.float32)
    # Pure VPU FMA chain — no MXU pass for a 3-wide dot product.
    o_ref[...] = x0 * w0 + x1 * w1 + x2 * w2 + b


def _pick_tile_rows(rows, max_tile_rows):
    """Largest multiple-of-8 divisor of `rows` that is <= max_tile_rows."""
    cap = max(8, int(max_tile_rows))
    if rows <= cap:
        return rows
    t = (cap // 8) * 8
    while t > 8 and rows % t != 0:
        t -= 8
    return t  # rows is a multiple of 8, so t=8 always divides it


def _pack_wb(w, b):
    return jnp.concatenate(
        [w.reshape(3).astype(jnp.float32), b.reshape(1).astype(jnp.float32)]
    ).reshape(1, 4)


def linear_forward_feature_major(x_fm, w, b, *, max_tile_rows=2048,
                                 cast_input_to_bf16=False):
    """Pallas path. x_fm: (3, n_pad) f32 feature-major, n_pad % 1024 == 0.

    Returns a flat (n_pad,) f32 vector (padded lanes evaluate to the bias).
    """
    n_pad = x_fm.shape[1]
    assert x_fm.shape[0] == 3 and n_pad % 1024 == 0
    rows = n_pad // 128
    tile_r = _pick_tile_rows(rows, max_tile_rows)

    # Free, row-major-preserving reshape: (3, n_pad) -> (3, rows, 128).
    x3 = x_fm.reshape(3, rows, 128)
    if cast_input_to_bf16:
        # Optional: halve HBM read bandwidth; accumulate in f32 in the kernel.
        x3 = x3.astype(jnp.bfloat16)

    wb = _pack_wb(w, b)

    out = pl.pallas_call(
        linear_kernel,
        out_shape=jax.ShapeDtypeStruct((rows, 128), jnp.float32),
        grid=(rows // tile_r,),
        in_specs=[
            pl.BlockSpec(memory_space=pltpu.SMEM),               # (1,4) scalars
            pl.BlockSpec((3, tile_r, 128), lambda i: (0, i, 0)),  # dense planes
        ],
        out_specs=pl.BlockSpec((tile_r, 128), lambda i: (i, 0)),
        compiler_params=pltpu.CompilerParams(
            dimension_semantics=("parallel",),
        ),
        cost_estimate=pl.CostEstimate(
            flops=7 * n_pad,
            bytes_accessed=16 * n_pad,
            transcendentals=0,
        ),
    )(wb, x3)

    return out.reshape(n_pad)


def linear_forward(x, w, b, *, max_tile_rows=2048, min_pallas_rows=65536,
                   cast_input_to_bf16=False):
    """x: (N, 3) f32, w: (1, 3) f32, b: (1,) f32 -> (N, 1) f32.

    Small / row-major batches go through plain fused XLA (single HBM pass);
    large batches are re-laid out feature-major and run through the Pallas
    kernel.  Set min_pallas_rows=0 to force the kernel path.
    """
    n = x.shape[0]
    x = x.astype(jnp.float32)

    if n < min_pallas_rows:
        # Fast path: the kernel moves ~16 B/row but the layout change would add
        # ~2x extra HBM traffic; a fused XLA matvec wins for modest N.
        return x @ w.reshape(1, 3).T.astype(jnp.float32) + b.astype(jnp.float32)

    # Pad batch to a multiple of 1024 (8 sublanes x 128 lanes) — padding quantum
    # is decoupled from the tile, so waste is bounded regardless of tile size.
    n_pad = 1024 * pl.cdiv(n, 1024)
    x_fm = jnp.zeros((3, n_pad), dtype=jnp.float32).at[:, :n].set(x.T)

    out_flat = linear_forward_feature_major(
        x_fm, w, b,
        max_tile_rows=max_tile_rows,
        cast_input_to_bf16=cast_input_to_bf16,
    )
    # Drop padding, restore (N, 1) like torch.nn.Linear(3, 1).
    return out_flat[:n].reshape(n, 1)


if __name__ == "__main__":
    key = jax.random.PRNGKey(0)
    kx, kw, kb, kx2 = jax.random.split(key, 4)

    # PyTorch-like init for Linear(3, 1): uniform(-1/sqrt(3), 1/sqrt(3)).
    bound = 1.0 / jnp.sqrt(3.0)
    w = jax.random.uniform(kw, (1, 3), dtype=jnp.float32, minval=-bound, maxval=bound)
    b = jax.random.uniform(kb, (1,), dtype=jnp.float32, minval=-bound, maxval=bound)

    # Small batch consistent with the module (batch=8, in_features=3); force the
    # Pallas path so the kernel is exercised.
    x = jax.random.normal(kx, (8, 3), dtype=jnp.float32)
    out = jax.block_until_ready(linear_forward(x, w, b, min_pallas_rows=0))
    ref = x @ w.T + b
    assert out.shape == (8, 1)
    assert jnp.allclose(out, ref, atol=1e-5, rtol=1e-5)

    # Larger, non-aligned batch: exercises padding-to-1024 + multi-step grid
    # (rows=40, tile_r=8 -> 5 grid steps).
    x2 = jax.random.normal(kx2, (5000, 3), dtype=jnp.float32)
    out2 = jax.block_until_ready(
        linear_forward(x2, w, b, min_pallas_rows=0, max_tile_rows=16)
    )
    ref2 = x2 @ w.T + b
    assert out2.shape == (5000, 1)
    assert jnp.allclose(out2, ref2, atol=1e-5, rtol=1e-5)

    # Small-batch fast path (plain fused XLA, no kernel) sanity check.
    out3 = jax.block_until_ready(linear_forward(x, w, b))
    assert jnp.allclose(out3, ref, atol=1e-5, rtol=1e-5)

    print("KERNEL_OK")
</pallas_src>

<mosaic_0001>
module attributes {stable_mosaic.version = 11 : i64} {
  func.func @linear_kernel(%arg0: i32, %arg1: memref<1x4xf32, #tpu.memory_space<smem>>, %arg2: memref<3x8x128xf32, #tpu.memory_space<vmem>>, %arg3: memref<8x128xf32, #tpu.memory_space<vmem>>) attributes {dimension_semantics = [#tpu.dimension_semantics<parallel>], iteration_bounds = array<i64: 1>, scalar_prefetch = 0 : i64, scratch_operands = 0 : i64, tpu.core_type = #tpu.core_type<tc>, window_params = [{transform_indices = @transform_0, window_bounds = array<i64: 1, 4>}, {transform_indices = @transform_1, window_bounds = array<i64: 3, 8, 128>}, {transform_indices = @transform_2, window_bounds = array<i64: 8, 128>}]} {
    %c0 = arith.constant 0 : index
    %c0_0 = arith.constant 0 : index
    %0 = memref.load %arg1[%c0, %c0_0] : memref<1x4xf32, #tpu.memory_space<smem>>
    %c0_1 = arith.constant 0 : index
    %c1 = arith.constant 1 : index
    %1 = memref.load %arg1[%c0_1, %c1] : memref<1x4xf32, #tpu.memory_space<smem>>
    %c0_2 = arith.constant 0 : index
    %c2 = arith.constant 2 : index
    %2 = memref.load %arg1[%c0_2, %c2] : memref<1x4xf32, #tpu.memory_space<smem>>
    %c0_3 = arith.constant 0 : index
    %c3 = arith.constant 3 : index
    %3 = memref.load %arg1[%c0_3, %c3] : memref<1x4xf32, #tpu.memory_space<smem>>
    %c0_4 = arith.constant 0 : index
    %c0_5 = arith.constant 0 : index
    %c0_6 = arith.constant 0 : index
    %4 = vector.load %arg2[%c0_4, %c0_5, %c0_6] : memref<3x8x128xf32, #tpu.memory_space<vmem>>, vector<1x8x128xf32>
    %5 = vector.shape_cast %4 : vector<1x8x128xf32> to vector<8x128xf32>
    %c1_7 = arith.constant 1 : index
    %c0_8 = arith.constant 0 : index
    %c0_9 = arith.constant 0 : index
    %6 = vector.load %arg2[%c1_7, %c0_8, %c0_9] : memref<3x8x128xf32, #tpu.memory_space<vmem>>, vector<1x8x128xf32>
    %7 = vector.shape_cast %6 : vector<1x8x128xf32> to vector<8x128xf32>
    %c2_10 = arith.constant 2 : index
    %c0_11 = arith.constant 0 : index
    %c0_12 = arith.constant 0 : index
    %8 = vector.load %arg2[%c2_10, %c0_11, %c0_12] : memref<3x8x128xf32, #tpu.memory_space<vmem>>, vector<1x8x128xf32>
    %9 = vector.shape_cast %8 : vector<1x8x128xf32> to vector<8x128xf32>
    %10 = vector.broadcast %0 : f32 to vector<8x128xf32>
    %11 = arith.mulf %5, %10 : vector<8x128xf32>
    %12 = vector.broadcast %1 : f32 to vector<8x128xf32>
    %13 = arith.mulf %7, %12 : vector<8x128xf32>
    %14 = arith.addf %11, %13 : vector<8x128xf32>
    %15 = vector.broadcast %2 : f32 to vector<8x128xf32>
    %16 = arith.mulf %9, %15 : vector<8x128xf32>
    %17 = arith.addf %14, %16 : vector<8x128xf32>
    %18 = vector.broadcast %3 : f32 to vector<8x128xf32>
    %19 = arith.addf %17, %18 : vector<8x128xf32>
    %c0_13 = arith.constant 0 : index
    %c0_14 = arith.constant 0 : index
    %20 = vector.load %arg3[%c0_13, %c0_14] : memref<8x128xf32, #tpu.memory_space<vmem>>, vector<8x128xf32>
    tpu.vector_store %arg3[%c0_13, %c0_14], %19 {strides = array<i32>} : memref<8x128xf32, #tpu.memory_space<vmem>>, vector<8x128xf32>,
    return
  }
  func.func @transform_0(%arg0: i32) -> (i32, i32) {
    %c0_i32 = arith.constant 0 : i32
    %c0_i32_0 = arith.constant 0 : i32
    %c0_i32_1 = arith.constant 0 : i32
    return %c0_i32, %c0_i32_0 : i32, i32
  }
  func.func @transform_1(%arg0: i32) -> (i32, i32, i32) {
    %c0_i32 = arith.constant 0 : i32
    %c0_i32_0 = arith.constant 0 : i32
    %c0_i32_1 = arith.constant 0 : i32
    return %c0_i32, %arg0, %c0_i32_0 : i32, i32, i32
  }
  func.func @transform_2(%arg0: i32) -> (i32, i32) {
    %c0_i32 = arith.constant 0 : i32
    %c0_i32_0 = arith.constant 0 : i32
    return %arg0, %c0_i32 : i32, i32
  }
}

</mosaic_0001>

<bundles_post_ra>
// kernel: tpu_custom_call.1
= control target key start
LH: loop header
LB: loop body
LE: loop exit
PB: predicated region body
PF: predicated region fallthrough
CT: control target
= control target key end

     0   :  { %7 = vsyncpa [#allocation5], 0  ;;  %s182_s0 = inlined_call_operand.hbm [shape: f32[1,4], index: 0, kind: input, shape index: {}]   ;;  %s183_s1 = inlined_call_operand.hbm [shape: f32[3,8,128], index: 1, kind: input, shape index: {}]   ;;  %s184_s2 = inlined_call_operand.hbm [shape: f32[8,128], index: 2, kind: output, shape index: {}]  }
   0x1   :  { %8 = vsyncpa [#allocation3], 0 }
   0x2   :  { %9 = vsyncpa [#allocation4], 0  ;;  %s15_s11 = sshll.u32 %s182_s0, 4  ;;  %s23_s14 = sshll.u32 %s183_s1, 4  ;;  %s16_s11 = int_to_ptr.hbm [resolvable:$true] %s15_s11  ;;  %s24_s14 = int_to_ptr.hbm [resolvable:$true] %s23_s14 }
   0x3   :  { %s153_s15 = smov [#allocation2]   ;;  %s154_s16 = smov [#allocation6]  }
   0x4   :  { %18 = dma.hbm_to_smem %s16_s11, 16, %s153_s15, [#allocation5]  }
   0x5   :  { %s25_s17 = sshll.u32 %s154_s16, 4  ;;  %s155_s18 = smov 128   ;;  %s26_s17 = int_to_ptr.vmem [resolvable:$true] %s25_s17 }
   0x6   :  { %s156_s19 = smov 8  }
   0x7   :  { %31 = dma.hbm_to_vmem [thread:$0]  %s24_s14, 384, %s26_s17, [#allocation3], %s155_s18, %s155_s18, %s156_s19  }
   0x8   :  { %147 = dma.done.wait [#allocation5], 16  }
   0x9   :  { %148 = vsyncadd [#allocation5], 4294967280 }
   0xa   :  { %149 = dma.done.wait [#allocation3], 384  }
   0xb   :  { %150 = vsyncadd [#allocation3], 4294966912 }
   0xc   :  { %40 = sfence }
   0xd   :  { %s41_s0 = sld [smem:[#allocation2]]  ;;  %v45_v0 = vld [vmem:[#allocation6] sm:$0xff]  ;;  %v47_v1 = vld [vmem:[#allocation6 + $0x8] sm:$0xff]  ;;  %v49_v2 = vld [vmem:[#allocation6 + $0x10] sm:$0xff]  ;;  %s157_s1 = smov [#allocation7]  }
   0xe   :  { %s79_s20 = sld [smem:[#allocation2 + $0x1]]  ;;  %s66_s23 = sshll.u32 %s157_s1, 4  ;;  %s67_s23 = int_to_ptr.vmem [resolvable:$true] %s66_s23 }
   0xf   :  { %s80_s21 = sld [smem:[#allocation2 + $0x2]]  ;;  %s68_s26 = sshll.u32 %s184_s2, 4  ;;  %s69_s26 = int_to_ptr.hbm [resolvable:$true] %s68_s26 }
  0x10   :  { %s81_s22 = sld [smem:[#allocation2 + $0x3]] }
  0x13   :  { %v50_v3 = vstv %s41_s0 }
  0x14   :  { %v51_v4 = vmul.f32 %v50_v3, %v45_v0  ;;  %v52_v5 = vstv %s79_s20 }
  0x15   :  { %v53_v6 = vmul.f32 %v52_v5, %v47_v1  ;;  %v55_v7 = vstv %s80_s21 }
  0x16   :  { %v56_v8 = vmul.f32 %v55_v7, %v49_v2  ;;  %v58_v10 = vstv %s81_s22 }
  0x17   :  { %v54_v9 = vadd.f32 %v53_v6, %v51_v4 }
  0x19   :  { %v57_v11 = vadd.f32 %v56_v8, %v54_v9 }
  0x1b   :  { %v59_v12 = vadd.f32 %v58_v10, %v57_v11 }
  0x1d   :  { %60 = vst [vmem:[#allocation7] sm:$0xff] %v59_v12 }
  0x1e   :  { %71 = dma.vmem_to_hbm [thread:$0]  %s67_s23, 128, %s69_s26, [#allocation4]  }
  0x1f   :  { %151 = dma.done.wait [#allocation4], 128  }
  0x20   :  { %152 = vsyncadd [#allocation4], 4294967168 }
  0x21   :  { %76 = vsyncpa [#allocation3], 1 }
  0x22   :  { %77 = vsyncpa [#allocation4], 1 }
  0x23   :  { %78 = vsyncpa [#allocation5], 1 }

</bundles_post_ra>
